<compile_context>
chip_gen: v6e
topology: v6e:2x2x1
jax: 0.10.0
libtpu: 0.0.40
codegen_flags: <defaults>
</compile_context>

<pallas_src>
import numpy as np
import jax
import jax.numpy as jnp
from jax.experimental import pallas as pl
from jax.experimental.pallas import tpu as pltpu


def _round_up(x, m):
    return (x + m - 1) // m * m


def make_spliced_forward(Np, Din_p, Dp, P, Cp, tot_p, tile_n, in_dtype,
                         flops, bytes_accessed):
    """Builds the fused Pallas forward for fixed (static, padded) shapes."""
    xv_cols = P * Cp
    grid = (Np // tile_n,)

    def kernel(x_ref, wb_ref, bb_ref, wcat_ref, o_ref):
        # --- base.truncated_forward: Linear + ReLU -> feat [tile_n, Dp] (MXU #1) ---
        feat = jnp.dot(x_ref[...], wb_ref[...], preferred_element_type=jnp.float32)
        feat = jnp.maximum(feat + bb_ref[...], 0.0)

        # --- single fused contraction for gate logits AND all cvx matmuls (MXU #2) ---
        # combined[:, :P*Cp]           -> xv[n, p, c] = (feat @ V[p])[n, c]   (C padded to Cp)
        # combined[:, P*Cp : P*Cp + P] -> gate logits (feat @ U)
        combined = jnp.dot(feat, wcat_ref[...], preferred_element_type=jnp.float32)
        xv = combined[:, :xv_cols].reshape(tile_n, P, Cp)          # lane-aligned head split
        logits = combined[:, xv_cols:xv_cols + P]                   # [tile_n, P]

        # --- gating: select instead of 0/1 float multiply, then reduce over P ---
        gated = jnp.where(logits[:, :, None] >= 0.0, xv, 0.0)       # [tile_n, P, Cp]
        o_ref[...] = gated.sum(axis=1)                               # lane-dense [tile_n, Cp]

    return pl.pallas_call(
        kernel,
        out_shape=jax.ShapeDtypeStruct((Np, Cp), jnp.float32),
        grid=grid,
        in_specs=[
            pl.BlockSpec((tile_n, Din_p), lambda i: (i, 0)),   # x rows (pipelined over grid)
            pl.BlockSpec((Din_p, Dp), lambda i: (0, 0)),       # base linear weight (resident)
            pl.BlockSpec((1, Dp), lambda i: (0, 0)),           # base linear bias (resident)
            pl.BlockSpec((Dp, tot_p), lambda i: (0, 0)),       # fused [V_flat | U] weight (resident)
        ],
        out_specs=pl.BlockSpec((tile_n, Cp), lambda i: (i, 0)),
        compiler_params=pltpu.CompilerParams(
            dimension_semantics=("parallel",)),
        cost_estimate=pl.CostEstimate(
            flops=flops, transcendentals=0, bytes_accessed=bytes_accessed),
    )


def spliced_forward(x_nchw, Wb, bb, U, V, use_bf16=False):
    """Fused Spliced.forward (robust branch). Returns [N, C] float32."""
    N = x_nchw.shape[0]
    Din = int(np.prod(x_nchw.shape[1:]))
    D, P = U.shape
    C = V.shape[-1]

    # Lane-dense padded dims.
    Din_p = _round_up(Din, 128)
    Dp = _round_up(D, 128)
    Cp = _round_up(C, 128)
    xv_cols = P * Cp
    tot_p = _round_up(xv_cols + P, 128)

    # Row tiling: sublane-aligned; grid over rows if the batch is large.
    Np = _round_up(N, 8)
    tile_n = Np if Np <= 256 else 256
    Np = _round_up(Np, tile_n)

    # bf16 only for the two large base-matmul operands (optional: hard >=0 gate
    # threshold can flip under reduced precision, so default is f32).
    in_dt = jnp.bfloat16 if use_bf16 else jnp.float32

    # Zero-padded operands (zero padding is exact: padded feat lanes stay 0 after ReLU).
    x_flat = x_nchw.reshape(N, -1).astype(in_dt)          # row-major, == torch .view(N, -1)
    x_pad = jnp.zeros((Np, Din_p), in_dt).at[:N, :Din].set(x_flat)
    wb_pad = jnp.zeros((Din_p, Dp), in_dt).at[:Din, :D].set(Wb.astype(in_dt))
    bb_pad = jnp.zeros((1, Dp), jnp.float32).at[:, :D].set(bb.astype(jnp.float32))

    # Fused weight: W_cat = [ V as (Dp, P*Cp) | U (Dp, P) | zero pad ].
    v_pad = jnp.zeros((P, Dp, Cp), jnp.float32).at[:, :D, :C].set(V.astype(jnp.float32))
    v_flat = jnp.transpose(v_pad, (1, 0, 2)).reshape(Dp, xv_cols)
    u_pad = jnp.zeros((Dp, P), jnp.float32).at[:D, :].set(U.astype(jnp.float32))
    wcat = jnp.zeros((Dp, tot_p), jnp.float32)
    wcat = wcat.at[:, :xv_cols].set(v_flat)
    wcat = wcat.at[:, xv_cols:xv_cols + P].set(u_pad)

    flops = 2 * N * Din * D + 2 * N * D * (P + P * C)
    bytes_accessed = int(
        x_pad.size * x_pad.dtype.itemsize + wb_pad.size * wb_pad.dtype.itemsize
        + bb_pad.size * 4 + wcat.size * 4 + Np * Cp * 4)

    fn = make_spliced_forward(Np, Din_p, Dp, P, Cp, tot_p, tile_n, in_dt,
                              flops, bytes_accessed)
    out_pad = fn(x_pad, wb_pad, bb_pad, wcat)
    return out_pad[:N, :C]


def reference_forward(x_nchw, Wb, bb, U, V):
    """Pure-JAX reference matching the PyTorch semantics."""
    hi = jax.lax.Precision.HIGHEST
    xf = x_nchw.reshape(x_nchw.shape[0], -1)
    feat = jnp.maximum(jnp.dot(xf, Wb, precision=hi) + bb, 0.0)
    gates = (jnp.dot(feat, U, precision=hi) >= 0.0).astype(jnp.float32)
    xv = jnp.einsum("nd,pdc->npc", feat, V, precision=hi)
    return jnp.einsum("np,npc->nc", gates, xv, precision=hi)


if __name__ == "__main__":
    # Small shapes consistent with the module's forward.
    N, C_in, H, W = 2, 4, 16, 16      # NCHW input to base
    Din = C_in * H * W                # 1024 flattened features
    D = 32                            # base.truncated_forward output dim == cvx input dim
    P = 8                             # number of u_vectors / gating patterns
    C = 10                            # cvx output (class) dim

    key = jax.random.PRNGKey(0)
    k1, k2, k3, k4, k5 = jax.random.split(key, 5)
    x = jax.random.normal(k1, (N, C_in, H, W), dtype=jnp.float32)
    Wb = jax.random.normal(k2, (Din, D), dtype=jnp.float32) * 0.05   # base linear weight
    bb = jax.random.normal(k3, (1, D), dtype=jnp.float32) * 0.05     # base linear bias
    U = jax.random.normal(k4, (D, P), dtype=jnp.float32)             # u_vectors (.float() in torch)
    V = jax.random.normal(k5, (P, D, C), dtype=jnp.float32) * 0.1    # cvx second-layer weights

    # TODO(synk): the non-robust branch (self.robust == False -> return base(x)) is plain
    # host-side control flow and is not part of the kernel.

    out = spliced_forward(x, Wb, bb, U, V)
    out = jax.block_until_ready(out)

    ref = reference_forward(x, Wb, bb, U, V)
    assert out.shape == (N, C)
    assert jnp.all(jnp.isfinite(out))
    assert jnp.allclose(out, ref, rtol=2e-2, atol=2e-2), (out, ref)

    print("KERNEL_OK")
</pallas_src>

<mosaic_0001>
module attributes {stable_mosaic.version = 11 : i64} {
  func.func @kernel(%arg0: i32, %arg1: memref<8x1024xf32, #tpu.memory_space<vmem>>, %arg2: memref<1024x128xf32, #tpu.memory_space<vmem>>, %arg3: memref<1x128xf32, #tpu.memory_space<vmem>>, %arg4: memref<128x1152xf32, #tpu.memory_space<vmem>>, %arg5: memref<8x128xf32, #tpu.memory_space<vmem>>) attributes {dimension_semantics = [#tpu.dimension_semantics<parallel>], iteration_bounds = array<i64: 1>, scalar_prefetch = 0 : i64, scratch_operands = 0 : i64, tpu.core_type = #tpu.core_type<tc>, window_params = [{transform_indices = @transform_0, window_bounds = array<i64: 8, 1024>}, {pipeline_mode = #tpu.pipeline_mode<synchronous>, transform_indices = @transform_1, window_bounds = array<i64: 1024, 128>}, {pipeline_mode = #tpu.pipeline_mode<synchronous>, transform_indices = @transform_2, window_bounds = array<i64: 1, 128>}, {pipeline_mode = #tpu.pipeline_mode<synchronous>, transform_indices = @transform_3, window_bounds = array<i64: 128, 1152>}, {transform_indices = @transform_4, window_bounds = array<i64: 8, 128>}]} {
    %c0 = arith.constant 0 : index
    %c0_0 = arith.constant 0 : index
    %0 = vector.load %arg1[%c0, %c0_0] : memref<8x1024xf32, #tpu.memory_space<vmem>>, vector<8x1024xf32>
    %c0_1 = arith.constant 0 : index
    %c0_2 = arith.constant 0 : index
    %1 = vector.load %arg2[%c0_1, %c0_2] : memref<1024x128xf32, #tpu.memory_space<vmem>>, vector<1024x128xf32>
    %cst = arith.constant dense<0.000000e+00> : vector<8x128xf32>
    %2 = tpu.matmul %0, %1, %cst {dimension_numbers = #tpu.dot_dimension_numbers<[1], [0], [0], [1], [0, 0, 1, 1], [], []>} : vector<8x1024xf32>, vector<1024x128xf32>, vector<8x128xf32> -> vector<8x128xf32>
    %c0_3 = arith.constant 0 : index
    %c0_4 = arith.constant 0 : index
    %3 = vector.load %arg3[%c0_3, %c0_4] : memref<1x128xf32, #tpu.memory_space<vmem>>, vector<1x128xf32>
    %4 = vector.broadcast %3 : vector<1x128xf32> to vector<8x128xf32>
    %5 = arith.addf %2, %4 : vector<8x128xf32>
    %cst_5 = arith.constant 0.000000e+00 : f32
    %6 = vector.broadcast %cst_5 : f32 to vector<8x128xf32>
    %7 = arith.maximumf %5, %6 : vector<8x128xf32>
    %c0_6 = arith.constant 0 : index
    %c0_7 = arith.constant 0 : index
    %8 = vector.load %arg4[%c0_6, %c0_7] : memref<128x1152xf32, #tpu.memory_space<vmem>>, vector<128x1152xf32>
    %cst_8 = arith.constant dense<0.000000e+00> : vector<8x1152xf32>
    %9 = tpu.matmul %7, %8, %cst_8 {dimension_numbers = #tpu.dot_dimension_numbers<[1], [0], [0], [1], [0, 0, 1, 1], [], []>} : vector<8x128xf32>, vector<128x1152xf32>, vector<8x1152xf32> -> vector<8x1152xf32>
    %10 = vector.extract_strided_slice %9 {offsets = [0, 0], sizes = [8, 1024], strides = [1, 1]} : vector<8x1152xf32> to vector<8x1024xf32>
    %11 = vector.shape_cast %10 : vector<8x1024xf32> to vector<8x8x128xf32>
    %12 = vector.extract_strided_slice %9 {offsets = [0, 1024], sizes = [8, 8], strides = [1, 1]} : vector<8x1152xf32> to vector<8x8xf32>
    %13 = vector.shape_cast %12 : vector<8x8xf32> to vector<8x8x1xf32>
    %cst_9 = arith.constant 0.000000e+00 : f32
    %14 = vector.broadcast %cst_9 : f32 to vector<8x8x1xf32>
    %15 = arith.cmpf oge, %13, %14 : vector<8x8x1xf32>
    %cst_10 = arith.constant 0.000000e+00 : f32
    %16 = vector.shape_cast %15 : vector<8x8x1xi1> to vector<8x8x1xi1>
    %17 = vector.broadcast %16 : vector<8x8x1xi1> to vector<8x8x128xi1>
    %18 = vector.broadcast %cst_10 : f32 to vector<8x8x128xf32>
    %19 = arith.select %17, %11, %18 : vector<8x8x128xi1>, vector<8x8x128xf32>
    %cst_11 = arith.constant dense<0.000000e+00> : vector<8x128xf32>
    %20 = vector.multi_reduction <add>, %19, %cst_11 [1] : vector<8x8x128xf32> to vector<8x128xf32>
    %c0_12 = arith.constant 0 : index
    %c0_13 = arith.constant 0 : index
    %21 = vector.load %arg5[%c0_12, %c0_13] : memref<8x128xf32, #tpu.memory_space<vmem>>, vector<8x128xf32>
    tpu.vector_store %arg5[%c0_12, %c0_13], %20 {strides = array<i32>} : memref<8x128xf32, #tpu.memory_space<vmem>>, vector<8x128xf32>,
    return
  }
  func.func @transform_0(%arg0: i32) -> (i32, i32) {
    %c0_i32 = arith.constant 0 : i32
    %c0_i32_0 = arith.constant 0 : i32
    return %arg0, %c0_i32 : i32, i32
  }
  func.func @transform_1(%arg0: i32) -> (i32, i32) {
    %c0_i32 = arith.constant 0 : i32
    %c0_i32_0 = arith.constant 0 : i32
    %c0_i32_1 = arith.constant 0 : i32
    return %c0_i32, %c0_i32_0 : i32, i32
  }
  func.func @transform_2(%arg0: i32) -> (i32, i32) {
    %c0_i32 = arith.constant 0 : i32
    %c0_i32_0 = arith.constant 0 : i32
    %c0_i32_1 = arith.constant 0 : i32
    return %c0_i32, %c0_i32_0 : i32, i32
  }
  func.func @transform_3(%arg0: i32) -> (i32, i32) {
    %c0_i32 = arith.constant 0 : i32
    %c0_i32_0 = arith.constant 0 : i32
    %c0_i32_1 = arith.constant 0 : i32
    return %c0_i32, %c0_i32_0 : i32, i32
  }
  func.func @transform_4(%arg0: i32) -> (i32, i32) {
    %c0_i32 = arith.constant 0 : i32
    %c0_i32_0 = arith.constant 0 : i32
    return %arg0, %c0_i32 : i32, i32
  }
}

</mosaic_0001>

<bundles_post_ra>
// kernel: tpu_custom_call.1
= control target key start
LH: loop header
LB: loop body
LE: loop exit
PB: predicated region body
PF: predicated region fallthrough
CT: control target
= control target key end

     0   :  { %9 = vsyncpa [#allocation3], 0  ;;  %s1706_s0 = inlined_call_operand.hbm [shape: f32[8,1024], index: 0, kind: input, shape index: {}]   ;;  %s1707_s1 = inlined_call_operand.hbm [shape: f32[1024,128], index: 1, kind: input, shape index: {}]   ;;  %s1708_s2 = inlined_call_operand.vmem [shape: f32[1,128], index: 2, kind: input, shape index: {}]   ;;  %s1709_s3 = inlined_call_operand.hbm [shape: f32[128,1152], index: 3, kind: input, shape index: {}]   ;;  %s1710_s4 = inlined_call_operand.hbm [shape: f32[8,128], index: 4, kind: output, shape index: {}]  }
   0x1   :  { %10 = vsyncpa [#allocation6], 0 }
   0x2   :  { %11 = vsyncpa [#allocation4], 0  ;;  %s1582_s15 = smov [#allocation5]  }
   0x3   :  { %s27_s16 = sshll.u32 %s1582_s15, 4  ;;  %s28_s16 = int_to_ptr.vmem [resolvable:$true] %s27_s16 }
   0x4   :  { %s1504_s17 = scalar_lea.vmem %s28_s16, 16384  ;;  %p1509_p1 = scmp.lt.s32.totalorder %s28_s16, %s28_s16 }
   0x5   :  { %p1505_p0 = scmp.ne.s32.totalorder %s28_s16, %s1504_s17  ;;  %p1510_p2 = scmp.lt.s32.totalorder %s1504_s17, %s1504_s17 }
   0x7   :  { %p1511_p3 = por %p1510_p2, %p1509_p1 }
   0x9   :  { %p1512_p4 = pnand %p1511_p3, %p1505_p0 }
   0xb   :  { %1515 = shalt.err (!%p1512_p4)
}
   0xc   :  { %s1583_s18 = smov 128   ;;  %s1584_s19 = smov 8  }
   0xd   :  { %33 = dma.hbm_to_vmem [thread:$0]  %s1707_s1, 16384, %s28_s16, [#allocation6], %s1583_s18, %s1583_s18, %s1584_s19  }
   0xe   :  { %s1585_s22 = smov [#allocation2]   ;;  %s1586_s24 = smov [#allocation7]  }
   0xf   :  { %s18_s23 = sshll.u32 %s1585_s22, 4  ;;  %s41_s25 = sshll.u32 %s1586_s24, 4  ;;  %s19_s23 = int_to_ptr.vmem [resolvable:$true] %s18_s23  ;;  %s42_s25 = int_to_ptr.vmem [resolvable:$true] %s41_s25 }
  0x10   :  { %s1524_s26 = scalar_lea.vmem %s19_s23, 1024  ;;  %p1529_p6 = scmp.lt.s32.totalorder %s19_s23, %s19_s23 }
  0x11   :  { %p1525_p5 = scmp.ne.s32.totalorder %s19_s23, %s1524_s26  ;;  %p1530_p7 = scmp.lt.s32.totalorder %s1524_s26, %s1524_s26 }
  0x13   :  { %p1531_p8 = por %p1530_p7, %p1529_p6 }
  0x15   :  { %p1532_p9 = pnand %p1531_p8, %p1525_p5 }
  0x17   :  { %1535 = shalt.err (!%p1532_p9)
}
  0x18   :  { %21 = dma.hbm_to_vmem [thread:$0]  %s1706_s0, 1024, %s19_s23, [#allocation3]  }
  0x19   :  { %s1544_s29 = scalar_lea.vmem %s42_s25, 18432  ;;  %p1549_p11 = scmp.lt.s32.totalorder %s42_s25, %s42_s25 }
  0x1a   :  { %p1545_p10 = scmp.ne.s32.totalorder %s42_s25, %s1544_s29  ;;  %p1550_p12 = scmp.lt.s32.totalorder %s1544_s29, %s1544_s29 }
  0x1c   :  { %p1551_p13 = por %p1550_p12, %p1549_p11 }
  0x1e   :  { %p1552_p0 = pnand %p1551_p13, %p1545_p10 }
  0x20   :  { %1555 = shalt.err (!%p1552_p0)
}
  0x21   :  { %s1587_s1 = smov 1152   ;;  %s1588_s30 = smov 72  }
  0x22   :  { %47 = dma.hbm_to_vmem [thread:$0]  %s1709_s3, 18432, %s42_s25, [#allocation6], %s1587_s1, %s1587_s1, %s1588_s30  }
  0x23   :  { %1576 = dma.done.wait [#allocation3], 1024  }
  0x24   :  { %1577 = vsyncadd [#allocation3], 4294966272 }
  0x25   :  { %1578 = dma.done.wait [#allocation6], 34816  }
  0x26   :  { %1579 = vsyncadd [#allocation6], 4294932480  ;;  %v96_v0 = vld [vmem:[#allocation5 + $0xf8] sm:$0xff]  ;;  %v95_v4 = vld [vmem:[#allocation5 + $0xf0] sm:$0xff]  ;;  %vm1590_vm0 = vmmov 0   ;;  %vm1259_vm7 = vcmask 1041409  }
  0x27   :  { %v128_v1 = vld [vmem:[#allocation5 + $0x1f8] sm:$0xff]  ;;  %1292 = vmatprep.subr.mxu0 %v96_v0  ;;  %v127_v5 = vld [vmem:[#allocation5 + $0x1f0] sm:$0xff]  ;;  %v94_v8 = vld [vmem:[#allocation5 + $0xe8] sm:$0xff]  ;;  %vm1261_vm8 = vcmask 1042434   ;;  %vm1263_vm11 = vcmask 1043459   ;;  %vm1265_vm12 = vcmask 1044484  }
  0x28   :  { %v80_v2 = vld [vmem:[#allocation5 + $0x78] sm:$0xff]  ;;  %1327 = vmatprep.subr.mxu1 %v128_v1  ;;  %v79_v6 = vld [vmem:[#allocation5 + $0x70] sm:$0xff]  ;;  %v126_v9 = vld [vmem:[#allocation5 + $0x1e8] sm:$0xff]  ;;  %vm1267_vm13 = vcmask 1045509   ;;  %vm1269_vm14 = vcmask 1046534   ;;  %vm1271_vm15 = vcmask 1047559  }
  0x29   :  { %v112_v3 = vld [vmem:[#allocation5 + $0x178] sm:$0xff]  ;;  %1293 = vmatpush3.msra.mxu0 %v80_v2  ;;  %v111_v7 = vld [vmem:[#allocation5 + $0x170] sm:$0xff]  ;;  %v78_v10 = vld [vmem:[#allocation5 + $0x68] sm:$0xff] }
  0x2a   :  { %1328 = vmatpush3.msra.mxu1 %v112_v3  ;;  %1294 = vmatprep.subr.mxu0 %v95_v4  ;;  %v110_v11 = vld [vmem:[#allocation5 + $0x168] sm:$0xff]  ;;  %v93_v12 = vld [vmem:[#allocation5 + $0xe0] sm:$0xff]  ;;  %v92_v16 = vld [vmem:[#allocation5 + $0xd8] sm:$0xff] }
  0x2b   :  { %1329 = vmatprep.subr.mxu1 %v127_v5  ;;  %1295 = vmatpush3.msra.mxu0 %v79_v6  ;;  %v125_v13 = vld [vmem:[#allocation5 + $0x1e0] sm:$0xff]  ;;  %v124_v17 = vld [vmem:[#allocation5 + $0x1d8] sm:$0xff]  ;;  %v91_v20 = vld [vmem:[#allocation5 + $0xd0] sm:$0xff] }
  0x2c   :  { %1330 = vmatpush3.msra.mxu1 %v111_v7  ;;  %1296 = vmatprep.subr.mxu0 %v94_v8  ;;  %v77_v14 = vld [vmem:[#allocation5 + $0x60] sm:$0xff]  ;;  %v76_v18 = vld [vmem:[#allocation5 + $0x58] sm:$0xff]  ;;  %v123_v21 = vld [vmem:[#allocation5 + $0x1d0] sm:$0xff] }
  0x2d   :  { %1331 = vmatprep.subr.mxu1 %v126_v9  ;;  %v109_v15 = vld [vmem:[#allocation5 + $0x160] sm:$0xff]  ;;  %1297 = vmatpush3.msra.mxu0 %v78_v10  ;;  %v108_v19 = vld [vmem:[#allocation5 + $0x158] sm:$0xff]  ;;  %v75_v22 = vld [vmem:[#allocation5 + $0x50] sm:$0xff] }
  0x2e   :  { %1332 = vmatpush3.msra.mxu1 %v110_v11  ;;  %1298 = vmatprep.subr.mxu0 %v93_v12  ;;  %v107_v23 = vld [vmem:[#allocation5 + $0x150] sm:$0xff]  ;;  %v90_v24 = vld [vmem:[#allocation5 + $0xc8] sm:$0xff]  ;;  %v89_v28 = vld [vmem:[#allocation5 + $0xc0] sm:$0xff] }
  0x2f   :  { %1333 = vmatprep.subr.mxu1 %v125_v13  ;;  %1299 = vmatpush3.msra.mxu0 %v77_v14  ;;  %v122_v25 = vld [vmem:[#allocation5 + $0x1c8] sm:$0xff]  ;;  %v121_v29 = vld [vmem:[#allocation5 + $0x1c0] sm:$0xff]  ;;  %v88_v32 = vld [vmem:[#allocation5 + $0xb8] sm:$0xff] }
  0x30   :  { %1334 = vmatpush3.msra.mxu1 %v109_v15  ;;  %1300 = vmatprep.subr.mxu0 %v92_v16  ;;  %v74_v26 = vld [vmem:[#allocation5 + $0x48] sm:$0xff]  ;;  %v73_v30 = vld [vmem:[#allocation5 + $0x40] sm:$0xff]  ;;  %v120_v33 = vld [vmem:[#allocation5 + $0x1b8] sm:$0xff] }
  0x31   :  { %1335 = vmatprep.subr.mxu1 %v124_v17  ;;  %1301 = vmatpush3.msra.mxu0 %v76_v18  ;;  %v106_v27 = vld [vmem:[#allocation5 + $0x148] sm:$0xff]  ;;  %v105_v31 = vld [vmem:[#allocation5 + $0x140] sm:$0xff]  ;;  %v72_v34 = vld [vmem:[#allocation5 + $0x38] sm:$0xff] }
  0x32   :  { %1336 = vmatpush3.msra.mxu1 %v108_v19  ;;  %1302 = vmatprep.subr.mxu0 %v91_v20  ;;  %v104_v35 = vld [vmem:[#allocation5 + $0x138] sm:$0xff]  ;;  %v87_v36 = vld [vmem:[#allocation5 + $0xb0] sm:$0xff]  ;;  %v86_v40 = vld [vmem:[#allocation5 + $0xa8] sm:$0xff] }
  0x33   :  { %1337 = vmatprep.subr.mxu1 %v123_v21  ;;  %1303 = vmatpush3.msra.mxu0 %v75_v22  ;;  %v119_v37 = vld [vmem:[#allocation5 + $0x1b0] sm:$0xff]  ;;  %v118_v41 = vld [vmem:[#allocation5 + $0x1a8] sm:$0xff]  ;;  %v85_v44 = vld [vmem:[#allocation5 + $0xa0] sm:$0xff] }
  0x34   :  { %1338 = vmatpush3.msra.mxu1 %v107_v23  ;;  %1304 = vmatprep.subr.mxu0 %v90_v24  ;;  %v71_v38 = vld [vmem:[#allocation5 + $0x30] sm:$0xff]  ;;  %v70_v42 = vld [vmem:[#allocation5 + $0x28] sm:$0xff]  ;;  %v117_v45 = vld [vmem:[#allocation5 + $0x1a0] sm:$0xff] }
  0x35   :  { %1339 = vmatprep.subr.mxu1 %v122_v25  ;;  %1305 = vmatpush3.msra.mxu0 %v74_v26  ;;  %v103_v39 = vld [vmem:[#allocation5 + $0x130] sm:$0xff]  ;;  %v102_v43 = vld [vmem:[#allocation5 + $0x128] sm:$0xff]  ;;  %v69_v46 = vld [vmem:[#allocation5 + $0x20] sm:$0xff] }
  0x36   :  { %1340 = vmatpush3.msra.mxu1 %v106_v27  ;;  %1306 = vmatprep.subr.mxu0 %v89_v28  ;;  %v101_v47 = vld [vmem:[#allocation5 + $0x120] sm:$0xff]  ;;  %v84_v48 = vld [vmem:[#allocation5 + $0x98] sm:$0xff]  ;;  %v83_v52 = vld [vmem:[#allocation5 + $0x90] sm:$0xff] }
  0x37   :  { %1341 = vmatprep.subr.mxu1 %v121_v29  ;;  %1307 = vmatpush3.msra.mxu0 %v73_v30  ;;  %v116_v49 = vld [vmem:[#allocation5 + $0x198] sm:$0xff]  ;;  %v115_v53 = vld [vmem:[#allocation5 + $0x190] sm:$0xff]  ;;  %v82_v56 = vld [vmem:[#allocation5 + $0x88] sm:$0xff] }
  0x38   :  { %1342 = vmatpush3.msra.mxu1 %v105_v31  ;;  %1308 = vmatprep.subr.mxu0 %v88_v32  ;;  %v68_v50 = vld [vmem:[#allocation5 + $0x18] sm:$0xff]  ;;  %v67_v54 = vld [vmem:[#allocation5 + $0x10] sm:$0xff]  ;;  %v114_v57 = vld [vmem:[#allocation5 + $0x188] sm:$0xff] }
  0x39   :  { %1343 = vmatprep.subr.mxu1 %v120_v33  ;;  %1309 = vmatpush3.msra.mxu0 %v72_v34  ;;  %v100_v51 = vld [vmem:[#allocation5 + $0x118] sm:$0xff]  ;;  %v99_v55 = vld [vmem:[#allocation5 + $0x110] sm:$0xff]  ;;  %v66_v58 = vld [vmem:[#allocation5 + $0x8] sm:$0xff] }
  0x3a   :  { %1344 = vmatpush3.msra.mxu1 %v104_v35  ;;  %1310 = vmatprep.subr.mxu0 %v87_v36  ;;  %v98_v59 = vld [vmem:[#allocation5 + $0x108] sm:$0xff]  ;;  %v81_v60 = vld [vmem:[#allocation5 + $0x80] sm:$0xff]  ;;  %v60_v2 = vld [vmem:[#allocation2 + $0x18] sm:$0xff] }
  0x3b   :  { %1345 = vmatprep.subr.mxu1 %v119_v37  ;;  %1311 = vmatpush3.msra.mxu0 %v71_v38  ;;  %v113_v61 = vld [vmem:[#allocation5 + $0x180] sm:$0xff]  ;;  %v58_v63 = vld [vmem:[#allocation2 + $0x8] sm:$0xff]  ;;  %v160_v3 = vld [vmem:[#allocation5 + $0x2f8] sm:$0xff] }
  0x3c   :  { %1346 = vmatpush3.msra.mxu1 %v103_v39  ;;  %1312 = vmatprep.subr.mxu0 %v86_v40  ;;  %v65_v62 = vld [vmem:[#allocation5] sm:$0xff]  ;;  %v192_v4 = vld [vmem:[#allocation5 + $0x3f8] sm:$0xff]  ;;  %v59_v5 = vld [vmem:[#allocation2 + $0x10] sm:$0xff] }
  0x3d   :  { %1347 = vmatprep.subr.mxu1 %v118_v41  ;;  %1313 = vmatpush3.msra.mxu0 %v70_v42  ;;  %v97_v0 = vld [vmem:[#allocation5 + $0x100] sm:$0xff]  ;;  %v144_v6 = vld [vmem:[#allocation5 + $0x278] sm:$0xff]  ;;  %v159_v8 = vld [vmem:[#allocation5 + $0x2f0] sm:$0xff] }
  0x3e   :  { %1348 = vmatpush3.msra.mxu1 %v102_v43  ;;  %1314 = vmatprep.subr.mxu0 %v85_v44  ;;  %v57_v1 = vld [vmem:[#allocation2] sm:$0xff]  ;;  %v176_v7 = vld [vmem:[#allocation5 + $0x378] sm:$0xff]  ;;  %v191_v9 = vld [vmem:[#allocation5 + $0x3f0] sm:$0xff] }
  0x3f   :  { %1349 = vmatprep.subr.mxu1 %v117_v45  ;;  %1315 = vmatpush3.msra.mxu0 %v69_v46  ;;  %v143_v10 = vld [vmem:[#allocation5 + $0x270] sm:$0xff]  ;;  %v158_v12 = vld [vmem:[#allocation5 + $0x2e8] sm:$0xff]  ;;  %v157_v16 = vld [vmem:[#allocation5 + $0x2e0] sm:$0xff] }
  0x40   :  { %1350 = vmatpush3.msra.mxu1 %v101_v47  ;;  %1316 = vmatprep.subr.mxu0 %v84_v48  ;;  %v175_v11 = vld [vmem:[#allocation5 + $0x370] sm:$0xff]  ;;  %v190_v13 = vld [vmem:[#allocation5 + $0x3e8] sm:$0xff]  ;;  %v189_v17 = vld [vmem:[#allocation5 + $0x3e0] sm:$0xff] }
  0x41   :  { %1351 = vmatprep.subr.mxu1 %v116_v49  ;;  %1317 = vmatpush3.msra.mxu0 %v68_v50  ;;  %v142_v14 = vld [vmem:[#allocation5 + $0x268] sm:$0xff]  ;;  %v141_v18 = vld [vmem:[#allocation5 + $0x260] sm:$0xff]  ;;  %v156_v20 = vld [vmem:[#allocation5 + $0x2d8] sm:$0xff] }
  0x42   :  { %1352 = vmatpush3.msra.mxu1 %v100_v51  ;;  %1318 = vmatprep.subr.mxu0 %v83_v52  ;;  %v174_v15 = vld [vmem:[#allocation5 + $0x368] sm:$0xff]  ;;  %v173_v19 = vld [vmem:[#allocation5 + $0x360] sm:$0xff]  ;;  %v188_v21 = vld [vmem:[#allocation5 + $0x3d8] sm:$0xff] }
  0x43   :  { %1353 = vmatprep.subr.mxu1 %v115_v53  ;;  %1319 = vmatpush3.msra.mxu0 %v67_v54  ;;  %v140_v22 = vld [vmem:[#allocation5 + $0x258] sm:$0xff]  ;;  %v155_v24 = vld [vmem:[#allocation5 + $0x2d0] sm:$0xff]  ;;  %v154_v28 = vld [vmem:[#allocation5 + $0x2c8] sm:$0xff] }
  0x44   :  { %1354 = vmatpush3.msra.mxu1 %v99_v55  ;;  %1320 = vmatprep.subr.mxu0 %v82_v56  ;;  %v172_v23 = vld [vmem:[#allocation5 + $0x358] sm:$0xff]  ;;  %v187_v25 = vld [vmem:[#allocation5 + $0x3d0] sm:$0xff]  ;;  %v186_v29 = vld [vmem:[#allocation5 + $0x3c8] sm:$0xff] }
  0x45   :  { %1355 = vmatprep.subr.mxu1 %v114_v57  ;;  %1321 = vmatpush3.msra.mxu0 %v66_v58  ;;  %v139_v26 = vld [vmem:[#allocation5 + $0x250] sm:$0xff]  ;;  %v138_v30 = vld [vmem:[#allocation5 + $0x248] sm:$0xff]  ;;  %v153_v32 = vld [vmem:[#allocation5 + $0x2c0] sm:$0xff] }
  0x46   :  { %1356 = vmatpush3.msra.mxu1 %v98_v59  ;;  %1322 = vmatprep.subr.mxu0 %v81_v60  ;;  %v171_v27 = vld [vmem:[#allocation5 + $0x350] sm:$0xff]  ;;  %v170_v31 = vld [vmem:[#allocation5 + $0x348] sm:$0xff]  ;;  %v185_v33 = vld [vmem:[#allocation5 + $0x3c0] sm:$0xff] }
  0x47   :  { %1357 = vmatprep.subr.mxu1 %v113_v61  ;;  %1323 = vmatpush3.msra.mxu0 %v65_v62  ;;  %v137_v34 = vld [vmem:[#allocation5 + $0x240] sm:$0xff]  ;;  %v152_v36 = vld [vmem:[#allocation5 + $0x2b8] sm:$0xff]  ;;  %v151_v40 = vld [vmem:[#allocation5 + $0x2b0] sm:$0xff] }
  0x48   :  { %264 = vmatprep.mubr.f32.mxu0 %v58_v63  ;;  %1358 = vmatpush3.msra.mxu1 %v97_v0  ;;  %v169_v35 = vld [vmem:[#allocation5 + $0x340] sm:$0xff]  ;;  %v184_v37 = vld [vmem:[#allocation5 + $0x3b8] sm:$0xff]  ;;  %v183_v41 = vld [vmem:[#allocation5 + $0x3b0] sm:$0xff] }
  0x49   :  { %265 = vmatmul.mubr.f32.vlgmr.msra.gmra.mxu0 %v57_v1  ;;  %334 = vmatprep.mubr.f32.mxu1 %v60_v2  ;;  %v136_v38 = vld [vmem:[#allocation5 + $0x238] sm:$0xff]  ;;  %v135_v42 = vld [vmem:[#allocation5 + $0x230] sm:$0xff]  ;;  %v150_v44 = vld [vmem:[#allocation5 + $0x2a8] sm:$0xff] }
  0x4a   :  { %1362 = vmatprep.subr.mxu0 %v160_v3  ;;  %1397 = vmatprep.subr.mxu1 %v192_v4  ;;  %v168_v39 = vld [vmem:[#allocation5 + $0x338] sm:$0xff]  ;;  %v167_v43 = vld [vmem:[#allocation5 + $0x330] sm:$0xff]  ;;  %v182_v45 = vld [vmem:[#allocation5 + $0x3a8] sm:$0xff] }
  0x4b   :  { %335 = vmatmul.mubr.f32.vlgmr.msra.gmra.mxu1 %v59_v5  ;;  %1363 = vmatpush3.msra.mxu0 %v144_v6  ;;  %v134_v46 = vld [vmem:[#allocation5 + $0x228] sm:$0xff]  ;;  %v149_v48 = vld [vmem:[#allocation5 + $0x2a0] sm:$0xff]  ;;  %v148_v52 = vld [vmem:[#allocation5 + $0x298] sm:$0xff] }
  0x4c   :  { %1398 = vmatpush3.msra.mxu1 %v176_v7  ;;  %1364 = vmatprep.subr.mxu0 %v159_v8  ;;  %v166_v47 = vld [vmem:[#allocation5 + $0x328] sm:$0xff]  ;;  %v181_v49 = vld [vmem:[#allocation5 + $0x3a0] sm:$0xff]  ;;  %v180_v53 = vld [vmem:[#allocation5 + $0x398] sm:$0xff] }
  0x4d   :  { %1399 = vmatprep.subr.mxu1 %v191_v9  ;;  %1365 = vmatpush3.msra.mxu0 %v143_v10  ;;  %v133_v50 = vld [vmem:[#allocation5 + $0x220] sm:$0xff]  ;;  %v132_v54 = vld [vmem:[#allocation5 + $0x218] sm:$0xff]  ;;  %v147_v56 = vld [vmem:[#allocation5 + $0x290] sm:$0xff] }
  0x4e   :  { %1400 = vmatpush3.msra.mxu1 %v175_v11  ;;  %1366 = vmatprep.subr.mxu0 %v158_v12  ;;  %v165_v51 = vld [vmem:[#allocation5 + $0x320] sm:$0xff]  ;;  %v164_v55 = vld [vmem:[#allocation5 + $0x318] sm:$0xff]  ;;  %v179_v57 = vld [vmem:[#allocation5 + $0x390] sm:$0xff] }
  0x4f   :  { %1401 = vmatprep.subr.mxu1 %v190_v13  ;;  %1367 = vmatpush3.msra.mxu0 %v142_v14  ;;  %v131_v58 = vld [vmem:[#allocation5 + $0x210] sm:$0xff]  ;;  %v146_v60 = vld [vmem:[#allocation5 + $0x288] sm:$0xff]  ;;  %v145_v0 = vld [vmem:[#allocation5 + $0x280] sm:$0xff] }
  0x50   :  { %1402 = vmatpush3.msra.mxu1 %v174_v15  ;;  %1368 = vmatprep.subr.mxu0 %v157_v16  ;;  %v163_v59 = vld [vmem:[#allocation5 + $0x310] sm:$0xff]  ;;  %v178_v61 = vld [vmem:[#allocation5 + $0x388] sm:$0xff]  ;;  %v177_v1 = vld [vmem:[#allocation5 + $0x380] sm:$0xff] }
  0x51   :  { %1403 = vmatprep.subr.mxu1 %v189_v17  ;;  %1369 = vmatpush3.msra.mxu0 %v141_v18  ;;  %v130_v62 = vld [vmem:[#allocation5 + $0x208] sm:$0xff]  ;;  %v129_v2 = vld [vmem:[#allocation5 + $0x200] sm:$0xff]  ;;  %v64_v5 = vld [vmem:[#allocation2 + $0x38] sm:$0xff] }
  0x52   :  { %1404 = vmatpush3.msra.mxu1 %v173_v19  ;;  %1370 = vmatprep.subr.mxu0 %v156_v20  ;;  %v162_v63 = vld [vmem:[#allocation5 + $0x308] sm:$0xff]  ;;  %v161_v4 = vld [vmem:[#allocation5 + $0x300] sm:$0xff]  ;;  %v63_v7 = vld [vmem:[#allocation2 + $0x30] sm:$0xff] }
  0x53   :  { %1405 = vmatprep.subr.mxu1 %v188_v21  ;;  %1371 = vmatpush3.msra.mxu0 %v140_v22  ;;  %v62_v3 = vld [vmem:[#allocation2 + $0x28] sm:$0xff]  ;;  %v61_v6 = vld [vmem:[#allocation2 + $0x20] sm:$0xff]  ;;  %v619_v9 = vld [vmem:[#allocation7 + $0x450] sm:$0xff] }
  0x54   :  { %1406 = vmatpush3.msra.mxu1 %v172_v23  ;;  %1372 = vmatprep.subr.mxu0 %v155_v24  ;;  %v617_v8 = vld [vmem:[#allocation7 + $0x440] sm:$0xff]  ;;  %v616_v10 = vld [vmem:[#allocation7 + $0x438] sm:$0xff]  ;;  %v618_v11 = vld [vmem:[#allocation7 + $0x448] sm:$0xff] }
  0x55   :  { %1407 = vmatprep.subr.mxu1 %v187_v25  ;;  %1373 = vmatpush3.msra.mxu0 %v139_v26  ;;  %v608_v12 = vld [vmem:[#allocation7 + $0x3f8] sm:$0xff]  ;;  %v610_v13 = vld [vmem:[#allocation7 + $0x408] sm:$0xff]  ;;  %v607_v14 = vld [vmem:[#allocation7 + $0x3f0] sm:$0xff] }
  0x56   :  { %1408 = vmatpush3.msra.mxu1 %v171_v27  ;;  %1374 = vmatprep.subr.mxu0 %v154_v28  ;;  %v609_v15 = vld [vmem:[#allocation7 + $0x400] sm:$0xff]  ;;  %v599_v16 = vld [vmem:[#allocation7 + $0x3b0] sm:$0xff]  ;;  %v598_v18 = vld [vmem:[#allocation7 + $0x3a8] sm:$0xff] }
  0x57   :  { %1409 = vmatprep.subr.mxu1 %v186_v29  ;;  %1375 = vmatpush3.msra.mxu0 %v138_v30  ;;  %v601_v17 = vld [vmem:[#allocation7 + $0x3c0] sm:$0xff]  ;;  %v600_v19 = vld [vmem:[#allocation7 + $0x3b8] sm:$0xff]  ;;  %v590_v20 = vld [vmem:[#allocation7 + $0x368] sm:$0xff] }
  0x58   :  { %1410 = vmatpush3.msra.mxu1 %v170_v31  ;;  %1376 = vmatprep.subr.mxu0 %v153_v32  ;;  %v592_v21 = vld [vmem:[#allocation7 + $0x378] sm:$0xff]  ;;  %v589_v22 = vld [vmem:[#allocation7 + $0x360] sm:$0xff]  ;;  %v591_v23 = vld [vmem:[#allocation7 + $0x370] sm:$0xff] }
  0x59   :  { %1411 = vmatprep.subr.mxu1 %v185_v33  ;;  %1377 = vmatpush3.msra.mxu0 %v137_v34  ;;  %v581_v24 = vld [vmem:[#allocation7 + $0x320] sm:$0xff]  ;;  %v583_v25 = vld [vmem:[#allocation7 + $0x330] sm:$0xff]  ;;  %v580_v26 = vld [vmem:[#allocation7 + $0x318] sm:$0xff] }
  0x5a   :  { %1412 = vmatpush3.msra.mxu1 %v169_v35  ;;  %1378 = vmatprep.subr.mxu0 %v152_v36  ;;  %v582_v27 = vld [vmem:[#allocation7 + $0x328] sm:$0xff]  ;;  %v572_v28 = vld [vmem:[#allocation7 + $0x2d8] sm:$0xff]  ;;  %v571_v30 = vld [vmem:[#allocation7 + $0x2d0] sm:$0xff] }
  0x5b   :  { %1413 = vmatprep.subr.mxu1 %v184_v37  ;;  %1379 = vmatpush3.msra.mxu0 %v136_v38  ;;  %v574_v29 = vld [vmem:[#allocation7 + $0x2e8] sm:$0xff]  ;;  %v573_v31 = vld [vmem:[#allocation7 + $0x2e0] sm:$0xff]  ;;  %v563_v32 = vld [vmem:[#allocation7 + $0x290] sm:$0xff] }
  0x5c   :  { %1414 = vmatpush3.msra.mxu1 %v168_v39  ;;  %1380 = vmatprep.subr.mxu0 %v151_v40  ;;  %v565_v33 = vld [vmem:[#allocation7 + $0x2a0] sm:$0xff]  ;;  %v562_v34 = vld [vmem:[#allocation7 + $0x288] sm:$0xff]  ;;  %v564_v35 = vld [vmem:[#allocation7 + $0x298] sm:$0xff] }
  0x5d   :  { %1415 = vmatprep.subr.mxu1 %v183_v41  ;;  %1381 = vmatpush3.msra.mxu0 %v135_v42  ;;  %v554_v36 = vld [vmem:[#allocation7 + $0x248] sm:$0xff]  ;;  %v556_v37 = vld [vmem:[#allocation7 + $0x258] sm:$0xff]  ;;  %v553_v38 = vld [vmem:[#allocation7 + $0x240] sm:$0xff] }
  0x5e   :  { %1416 = vmatpush3.msra.mxu1 %v167_v43  ;;  %1382 = vmatprep.subr.mxu0 %v150_v44  ;;  %v555_v39 = vld [vmem:[#allocation7 + $0x250] sm:$0xff]  ;;  %v545_v40 = vld [vmem:[#allocation7 + $0x200] sm:$0xff]  ;;  %v544_v42 = vld [vmem:[#allocation7 + $0x1f8] sm:$0xff] }
  0x5f   :  { %1417 = vmatprep.subr.mxu1 %v182_v45  ;;  %1383 = vmatpush3.msra.mxu0 %v134_v46  ;;  %v547_v41 = vld [vmem:[#allocation7 + $0x210] sm:$0xff]  ;;  %v546_v43 = vld [vmem:[#allocation7 + $0x208] sm:$0xff]  ;;  %v536_v44 = vld [vmem:[#allocation7 + $0x1b8] sm:$0xff] }
  0x60   :  { %1418 = vmatpush3.msra.mxu1 %v166_v47  ;;  %1384 = vmatprep.subr.mxu0 %v149_v48  ;;  %v538_v45 = vld [vmem:[#allocation7 + $0x1c8] sm:$0xff]  ;;  %v535_v46 = vld [vmem:[#allocation7 + $0x1b0] sm:$0xff]  ;;  %v537_v47 = vld [vmem:[#allocation7 + $0x1c0] sm:$0xff] }
  0x61   :  { %1419 = vmatprep.subr.mxu1 %v181_v49  ;;  %1385 = vmatpush3.msra.mxu0 %v133_v50  ;;  %v527_v48 = vld [vmem:[#allocation7 + $0x170] sm:$0xff]  ;;  %v529_v49 = vld [vmem:[#allocation7 + $0x180] sm:$0xff]  ;;  %v526_v50 = vld [vmem:[#allocation7 + $0x168] sm:$0xff] }
  0x62   :  { %1420 = vmatpush3.msra.mxu1 %v165_v51  ;;  %1386 = vmatprep.subr.mxu0 %v148_v52  ;;  %v528_v51 = vld [vmem:[#allocation7 + $0x178] sm:$0xff]  ;;  %v518_v52 = vld [vmem:[#allocation7 + $0x128] sm:$0xff] }
  0x63   :  { %1421 = vmatprep.subr.mxu1 %v180_v53  ;;  %1387 = vmatpush3.msra.mxu0 %v132_v54  ;;  %v520_v53 = vld [vmem:[#allocation7 + $0x138] sm:$0xff]  ;;  %v517_v54 = vld [vmem:[#allocation7 + $0x120] sm:$0xff] }
  0x64   :  { %1422 = vmatpush3.msra.mxu1 %v164_v55  ;;  %1388 = vmatprep.subr.mxu0 %v147_v56  ;;  %v519_v55 = vld [vmem:[#allocation7 + $0x130] sm:$0xff]  ;;  %v509_v56 = vld [vmem:[#allocation7 + $0xe0] sm:$0xff] }
  0x65   :  { %1423 = vmatprep.subr.mxu1 %v179_v57  ;;  %1389 = vmatpush3.msra.mxu0 %v131_v58  ;;  %v511_v57 = vld [vmem:[#allocation7 + $0xf0] sm:$0xff]  ;;  %v508_v58 = vld [vmem:[#allocation7 + $0xd8] sm:$0xff] }
  0x66   :  { %1424 = vmatpush3.msra.mxu1 %v163_v59  ;;  %1390 = vmatprep.subr.mxu0 %v146_v60  ;;  %v510_v59 = vld [vmem:[#allocation7 + $0xe8] sm:$0xff]  ;;  %v500_v60 = vld [vmem:[#allocation7 + $0x98] sm:$0xff] }
  0x67   :  { %1425 = vmatprep.subr.mxu1 %v178_v61  ;;  %1391 = vmatpush3.msra.mxu0 %v130_v62  ;;  %v502_v61 = vld [vmem:[#allocation7 + $0xa8] sm:$0xff]  ;;  %v499_v62 = vld [vmem:[#allocation7 + $0x90] sm:$0xff] }
  0x68   :  { %1426 = vmatpush3.msra.mxu1 %v162_v63  ;;  %1392 = vmatprep.subr.mxu0 %v145_v0  ;;  %v501_v63 = vld [vmem:[#allocation7 + $0xa0] sm:$0xff]  ;;  %v491_v0 = vld [vmem:[#allocation7 + $0x50] sm:$0xff] }
  0x69   :  { %1427 = vmatprep.subr.mxu1 %v177_v1  ;;  %1393 = vmatpush3.msra.mxu0 %v129_v2  ;;  %v493_v1 = vld [vmem:[#allocation7 + $0x60] sm:$0xff]  ;;  %v490_v2 = vld [vmem:[#allocation7 + $0x48] sm:$0xff] }
  0x6a   :  { %404 = vmatprep.mubr.f32.mxu0 %v62_v3  ;;  %1428 = vmatpush3.msra.mxu1 %v161_v4  ;;  %v492_v3 = vld [vmem:[#allocation7 + $0x58] sm:$0xff]  ;;  %v482_v4 = vld [vmem:[#allocation7 + $0x8] sm:$0xff] }
  0x6b   :  { %474 = vmatprep.mubr.f32.mxu1 %v64_v5  ;;  %405 = vmatmul.mubr.f32.vlgmr.msra.gmra.mxu0 %v61_v6  ;;  %v484_v5 = vld [vmem:[#allocation7 + $0x18] sm:$0xff]  ;;  %v481_v6 = vld [vmem:[#allocation7] sm:$0xff] }
  0x6c   :  { %475 = vmatmul.mubr.f32.vlgmr.msra.gmra.mxu1 %v63_v7  ;;  %625 = vmatprep.subr.mxu0 %v617_v8  ;;  %v483_v7 = vld [vmem:[#allocation7 + $0x10] sm:$0xff]  ;;  %v621_v8 = vld [vmem:[#allocation7 + $0x460] sm:$0xff] }
  0x6d   :  { %696 = vmatprep.subr.mxu1 %v619_v9  ;;  %626 = vmatpush1.msra.mxu0 %v616_v10  ;;  %v623_v9 = vld [vmem:[#allocation7 + $0x470] sm:$0xff]  ;;  %v1589_v10 = vmov 0.0  }
  0x6e   :  { %697 = vmatpush1.msra.mxu1 %v618_v11  ;;  %627 = vmatprep.subr.mxu0 %v608_v12 }
  0x6f   :  { %698 = vmatprep.subr.mxu1 %v610_v13  ;;  %628 = vmatpush1.msra.mxu0 %v607_v14 }
  0x70   :  { %699 = vmatpush1.msra.mxu1 %v609_v15  ;;  %629 = vmatprep.subr.mxu0 %v599_v16  ;;  %v1291_v15 = vld [vmem:[%s1708_s2] ss:$0 sm:$0xff]  ;;  %s1593_s2 = smov [#allocation8]  }
  0x71   :  { %700 = vmatprep.subr.mxu1 %v601_v17  ;;  %630 = vmatpush1.msra.mxu0 %v598_v18  ;;  %s1281_s7 = sshll.u32 %s1593_s2, 4  ;;  %s1282_s7 = int_to_ptr.vmem [resolvable:$true] %s1281_s7 }
  0x72   :  { %701 = vmatpush1.msra.mxu1 %v600_v19  ;;  %631 = vmatprep.subr.mxu0 %v590_v20  ;;  %s1556_s8 = scalar_lea.vmem %s1282_s7, 128  ;;  %p1561_p2 = scmp.lt.s32.totalorder %s1282_s7, %s1282_s7 }
  0x73   :  { %702 = vmatprep.subr.mxu1 %v592_v21  ;;  %632 = vmatpush1.msra.mxu0 %v589_v22  ;;  %p1557_p1 = scmp.ne.s32.totalorder %s1282_s7, %s1556_s8  ;;  %p1562_p3 = scmp.lt.s32.totalorder %s1556_s8, %s1556_s8 }
  0x74   :  { %703 = vmatpush1.msra.mxu1 %v591_v23  ;;  %633 = vmatprep.subr.mxu0 %v581_v24 }
  0x75   :  { %704 = vmatprep.subr.mxu1 %v583_v25  ;;  %634 = vmatpush1.msra.mxu0 %v580_v26  ;;  %p1563_p4 = por %p1562_p3, %p1561_p2 }
  0x76   :  { %705 = vmatpush1.msra.mxu1 %v582_v27  ;;  %635 = vmatprep.subr.mxu0 %v572_v28 }
  0x77   :  { %706 = vmatprep.subr.mxu1 %v574_v29  ;;  %636 = vmatpush1.msra.mxu0 %v571_v30  ;;  %v620_v29 = vld [vmem:[#allocation7 + $0x458] sm:$0xff]  ;;  %v622_v30 = vld [vmem:[#allocation7 + $0x468] sm:$0xff]  ;;  %p1564_p5 = pnand %p1563_p4, %p1557_p1 }
  0x78   :  { %707 = vmatpush1.msra.mxu1 %v573_v31  ;;  %637 = vmatprep.subr.mxu0 %v563_v32  ;;  %v612_v31 = vld [vmem:[#allocation7 + $0x418] sm:$0xff]  ;;  %v614_v32 = vld [vmem:[#allocation7 + $0x428] sm:$0xff] }
  0x79   :  { %708 = vmatprep.subr.mxu1 %v565_v33  ;;  %638 = vmatpush1.msra.mxu0 %v562_v34  ;;  %v611_v33 = vld [vmem:[#allocation7 + $0x410] sm:$0xff]  ;;  %v613_v34 = vld [vmem:[#allocation7 + $0x420] sm:$0xff] }
  0x7a   :  { %709 = vmatpush1.msra.mxu1 %v564_v35  ;;  %639 = vmatprep.subr.mxu0 %v554_v36  ;;  %v603_v35 = vld [vmem:[#allocation7 + $0x3d0] sm:$0xff]  ;;  %v605_v36 = vld [vmem:[#allocation7 + $0x3e0] sm:$0xff] }
  0x7b   :  { %710 = vmatprep.subr.mxu1 %v556_v37  ;;  %640 = vmatpush1.msra.mxu0 %v553_v38  ;;  %v602_v37 = vld [vmem:[#allocation7 + $0x3c8] sm:$0xff]  ;;  %v604_v38 = vld [vmem:[#allocation7 + $0x3d8] sm:$0xff] }
  0x7c   :  { %711 = vmatpush1.msra.mxu1 %v555_v39  ;;  %641 = vmatprep.subr.mxu0 %v545_v40  ;;  %v594_v39 = vld [vmem:[#allocation7 + $0x388] sm:$0xff]  ;;  %v596_v40 = vld [vmem:[#allocation7 + $0x398] sm:$0xff] }
  0x7d   :  { %712 = vmatprep.subr.mxu1 %v547_v41  ;;  %642 = vmatpush1.msra.mxu0 %v544_v42  ;;  %v593_v41 = vld [vmem:[#allocation7 + $0x380] sm:$0xff]  ;;  %v595_v42 = vld [vmem:[#allocation7 + $0x390] sm:$0xff] }
  0x7e   :  { %713 = vmatpush1.msra.mxu1 %v546_v43  ;;  %643 = vmatprep.subr.mxu0 %v536_v44  ;;  %v585_v43 = vld [vmem:[#allocation7 + $0x340] sm:$0xff]  ;;  %v587_v44 = vld [vmem:[#allocation7 + $0x350] sm:$0xff] }
  0x7f   :  { %714 = vmatprep.subr.mxu1 %v538_v45  ;;  %644 = vmatpush1.msra.mxu0 %v535_v46  ;;  %v584_v45 = vld [vmem:[#allocation7 + $0x338] sm:$0xff]  ;;  %v586_v46 = vld [vmem:[#allocation7 + $0x348] sm:$0xff] }
  0x80   :  { %715 = vmatpush1.msra.mxu1 %v537_v47  ;;  %645 = vmatprep.subr.mxu0 %v527_v48  ;;  %v576_v47 = vld [vmem:[#allocation7 + $0x2f8] sm:$0xff]  ;;  %v578_v48 = vld [vmem:[#allocation7 + $0x308] sm:$0xff] }
  0x81   :  { %716 = vmatprep.subr.mxu1 %v529_v49  ;;  %646 = vmatpush1.msra.mxu0 %v526_v50  ;;  %v575_v49 = vld [vmem:[#allocation7 + $0x2f0] sm:$0xff]  ;;  %v577_v50 = vld [vmem:[#allocation7 + $0x300] sm:$0xff] }
  0x82   :  { %717 = vmatpush1.msra.mxu1 %v528_v51  ;;  %647 = vmatprep.subr.mxu0 %v518_v52  ;;  %v567_v51 = vld [vmem:[#allocation7 + $0x2b0] sm:$0xff]  ;;  %v569_v52 = vld [vmem:[#allocation7 + $0x2c0] sm:$0xff] }
  0x83   :  { %718 = vmatprep.subr.mxu1 %v520_v53  ;;  %648 = vmatpush1.msra.mxu0 %v517_v54  ;;  %v566_v53 = vld [vmem:[#allocation7 + $0x2a8] sm:$0xff]  ;;  %v568_v54 = vld [vmem:[#allocation7 + $0x2b8] sm:$0xff] }
  0x84   :  { %719 = vmatpush1.msra.mxu1 %v519_v55  ;;  %649 = vmatprep.subr.mxu0 %v509_v56  ;;  %v558_v55 = vld [vmem:[#allocation7 + $0x268] sm:$0xff]  ;;  %v560_v56 = vld [vmem:[#allocation7 + $0x278] sm:$0xff] }
  0x85   :  { %720 = vmatprep.subr.mxu1 %v511_v57  ;;  %650 = vmatpush1.msra.mxu0 %v508_v58  ;;  %v557_v57 = vld [vmem:[#allocation7 + $0x260] sm:$0xff]  ;;  %v559_v58 = vld [vmem:[#allocation7 + $0x270] sm:$0xff] }
  0x86   :  { %721 = vmatpush1.msra.mxu1 %v510_v59  ;;  %651 = vmatprep.subr.mxu0 %v500_v60  ;;  %v549_v59 = vld [vmem:[#allocation7 + $0x220] sm:$0xff]  ;;  %v551_v60 = vld [vmem:[#allocation7 + $0x230] sm:$0xff] }
  0x87   :  { %722 = vmatprep.subr.mxu1 %v502_v61  ;;  %652 = vmatpush1.msra.mxu0 %v499_v62  ;;  %v548_v61 = vld [vmem:[#allocation7 + $0x218] sm:$0xff]  ;;  %v550_v62 = vld [vmem:[#allocation7 + $0x228] sm:$0xff] }
  0x88   :  { %723 = vmatpush1.msra.mxu1 %v501_v63  ;;  %653 = vmatprep.subr.mxu0 %v491_v0  ;;  %v540_v63 = vld [vmem:[#allocation7 + $0x1d8] sm:$0xff]  ;;  %v542_v0 = vld [vmem:[#allocation7 + $0x1e8] sm:$0xff] }
  0x89   :  { %724 = vmatprep.subr.mxu1 %v493_v1  ;;  %654 = vmatpush1.msra.mxu0 %v490_v2  ;;  %v539_v1 = vld [vmem:[#allocation7 + $0x1d0] sm:$0xff]  ;;  %v541_v2 = vld [vmem:[#allocation7 + $0x1e0] sm:$0xff] }
  0x8a   :  { %725 = vmatpush1.msra.mxu1 %v492_v3  ;;  %655 = vmatprep.subr.mxu0 %v482_v4  ;;  %v531_v3 = vld [vmem:[#allocation7 + $0x190] sm:$0xff]  ;;  %v533_v4 = vld [vmem:[#allocation7 + $0x1a0] sm:$0xff] }
  0x8b   :  { %726 = vmatprep.subr.mxu1 %v484_v5  ;;  %656 = vmatpush1.msra.mxu0 %v481_v6  ;;  %v530_v5 = vld [vmem:[#allocation7 + $0x188] sm:$0xff]  ;;  %v532_v6 = vld [vmem:[#allocation7 + $0x198] sm:$0xff] }
  0x8c   :  { %727 = vmatpush1.msra.mxu1 %v483_v7  ;;  %689 = vmatprep.mubr.f32.mxu0 %v1589_v10  ;;  %v522_v7 = vld [vmem:[#allocation7 + $0x148] sm:$0xff] }
  0x8d   :  { %760 = vmatprep.mubr.f32.mxu1 %v1589_v10  ;;  %767 = vmatprep.subr.mxu0 %v621_v8  ;;  %v524_v8 = vld [vmem:[#allocation7 + $0x158] sm:$0xff] }
  0x8e   :  { %838 = vmatprep.subr.mxu1 %v623_v9  ;;  %v521_v9 = vld [vmem:[#allocation7 + $0x140] sm:$0xff] }
 0x109   :  { %v1324_v11 = vpop.f32.mrf.mxu0 }
 0x10b   :  { %v1359_v12 = vpop.f32.mrf.mxu1  ;;  %v1325_v13 = vpop.f32.mrf.mxu0 }
 0x10c   :  { %v1326_v14 = vadd.f32 %v1325_v13, %v1324_v11  ;;  %v523_v11 = vld [vmem:[#allocation7 + $0x150] sm:$0xff] }
 0x10d   :  { %v1360_v16 = vpop.f32.mrf.mxu1  ;;  %v515_v13 = vld [vmem:[#allocation7 + $0x110] sm:$0xff] }
 0x10e   :  { %v267_v17 = vadd.f32 %v1326_v14, %v1291_v15  ;;  %v1361_v18 = vadd.f32 %v1360_v16, %v1359_v12  ;;  %v513_v12 = vld [vmem:[#allocation7 + $0x100] sm:$0xff]  ;;  %v512_v14 = vld [vmem:[#allocation7 + $0xf8] sm:$0xff]  ;;  %v514_v15 = vld [vmem:[#allocation7 + $0x108] sm:$0xff] }
 0x10f   :  { %v504_v16 = vld [vmem:[#allocation7 + $0xb8] sm:$0xff] }
 0x110   :  { %v337_v23 = vadd.f32 %v1361_v18, %v267_v17  ;;  %v506_v17 = vld [vmem:[#allocation7 + $0xc8] sm:$0xff]  ;;  %v503_v18 = vld [vmem:[#allocation7 + $0xb0] sm:$0xff] }
 0x12b   :  { %v1394_v19 = vpop.f32.mrf.mxu0 }
 0x12c   :  { %v1429_v20 = vpop.f32.mrf.mxu1 }
 0x12d   :  { %v1395_v21 = vpop.f32.mrf.mxu0 }
 0x12e   :  { %v1430_v22 = vpop.f32.mrf.mxu1  ;;  %v1396_v24 = vadd.f32 %v1395_v21, %v1394_v19  ;;  %v505_v19 = vld [vmem:[#allocation7 + $0xc0] sm:$0xff] }
 0x12f   :  { %v1431_v26 = vadd.f32 %v1430_v22, %v1429_v20  ;;  %v495_v20 = vld [vmem:[#allocation7 + $0x70] sm:$0xff]  ;;  %v497_v21 = vld [vmem:[#allocation7 + $0x80] sm:$0xff]  ;;  %v494_v22 = vld [vmem:[#allocation7 + $0x68] sm:$0xff] }
 0x130   :  { %v407_v25 = vadd.f32 %v1396_v24, %v337_v23  ;;  %v496_v23 = vld [vmem:[#allocation7 + $0x78] sm:$0xff]  ;;  %v486_v24 = vld [vmem:[#allocation7 + $0x28] sm:$0xff] }
 0x132   :  { %v477_v27 = vadd.f32 %v1431_v26, %v407_v25  ;;  %v488_v25 = vld [vmem:[#allocation7 + $0x38] sm:$0xff]  ;;  %v485_v26 = vld [vmem:[#allocation7 + $0x20] sm:$0xff] }
 0x134   :  { %v1633_v28 = vmax.f32 %v477_v27, 0.0  ;;  %v487_v27 = vld [vmem:[#allocation7 + $0x30] sm:$0xff] }
 0x136   :  { %690 = vmatmul.mubr.f32.vlgmr.msra.gmra.mxu0 %v1633_v28  ;;  %761 = vmatmul.mubr.f32.vlgmr.msra.gmra.mxu1 %v1633_v28 }
 0x137   :  { %768 = vmatpush1.msra.mxu0 %v620_v29  ;;  %839 = vmatpush1.msra.mxu1 %v622_v30  ;;  %v624_v29 = vld [vmem:[#allocation7 + $0x478] sm:$0xff]  ;;  %v615_v30 = vld [vmem:[#allocation7 + $0x430] sm:$0xff] }
 0x138   :  { %769 = vmatprep.subr.mxu0 %v612_v31  ;;  %840 = vmatprep.subr.mxu1 %v614_v32  ;;  %v606_v31 = vld [vmem:[#allocation7 + $0x3e8] sm:$0xff]  ;;  %v597_v32 = vld [vmem:[#allocation7 + $0x3a0] sm:$0xff] }
 0x139   :  { %770 = vmatpush1.msra.mxu0 %v611_v33  ;;  %841 = vmatpush1.msra.mxu1 %v613_v34  ;;  %v588_v33 = vld [vmem:[#allocation7 + $0x358] sm:$0xff]  ;;  %v579_v34 = vld [vmem:[#allocation7 + $0x310] sm:$0xff] }
 0x13a   :  { %771 = vmatprep.subr.mxu0 %v603_v35  ;;  %842 = vmatprep.subr.mxu1 %v605_v36  ;;  %v570_v35 = vld [vmem:[#allocation7 + $0x2c8] sm:$0xff]  ;;  %v561_v36 = vld [vmem:[#allocation7 + $0x280] sm:$0xff] }
 0x13b   :  { %772 = vmatpush1.msra.mxu0 %v602_v37  ;;  %843 = vmatpush1.msra.mxu1 %v604_v38  ;;  %v552_v37 = vld [vmem:[#allocation7 + $0x238] sm:$0xff]  ;;  %v543_v38 = vld [vmem:[#allocation7 + $0x1f0] sm:$0xff] }
 0x13c   :  { %773 = vmatprep.subr.mxu0 %v594_v39  ;;  %844 = vmatprep.subr.mxu1 %v596_v40  ;;  %v534_v39 = vld [vmem:[#allocation7 + $0x1a8] sm:$0xff]  ;;  %v525_v40 = vld [vmem:[#allocation7 + $0x160] sm:$0xff] }
 0x13d   :  { %774 = vmatpush1.msra.mxu0 %v593_v41  ;;  %845 = vmatpush1.msra.mxu1 %v595_v42  ;;  %v516_v41 = vld [vmem:[#allocation7 + $0x118] sm:$0xff]  ;;  %v507_v42 = vld [vmem:[#allocation7 + $0xd0] sm:$0xff] }
 0x13e   :  { %775 = vmatprep.subr.mxu0 %v585_v43  ;;  %846 = vmatprep.subr.mxu1 %v587_v44  ;;  %v498_v43 = vld [vmem:[#allocation7 + $0x88] sm:$0xff]  ;;  %v489_v44 = vld [vmem:[#allocation7 + $0x40] sm:$0xff] }
 0x13f   :  { %776 = vmatpush1.msra.mxu0 %v584_v45  ;;  %847 = vmatpush1.msra.mxu1 %v586_v46  ;;  %v1591_v45 = vmov 1983009808  }
 0x140   :  { %777 = vmatprep.subr.mxu0 %v576_v47  ;;  %848 = vmatprep.subr.mxu1 %v578_v48  ;;  %v982_v46 = vunpack.c.l.s4 %v1591_v45  ;;  %v984_v47 = vlaneseq }
 0x141   :  { %778 = vmatpush1.msra.mxu0 %v575_v49  ;;  %849 = vmatpush1.msra.mxu1 %v577_v50  ;;  %v1592_v50 = vmov 1934713408  }
 0x142   :  { %779 = vmatprep.subr.mxu0 %v567_v51  ;;  %850 = vmatprep.subr.mxu1 %v569_v52  ;;  %v983_v48 = vunpack.c.0.s8 %v982_v46  ;;  %v1659_v49 = vshrl.u32 %v984_v47, 7  ;;  %v1046_v51 = vunpack.c.l.s4 %v1592_v50 }
 0x143   :  { %780 = vmatpush1.msra.mxu0 %v566_v53  ;;  %851 = vmatpush1.msra.mxu1 %v568_v54 }
 0x144   :  { %781 = vmatprep.subr.mxu0 %v558_v55  ;;  %852 = vmatprep.subr.mxu1 %v560_v56  ;;  %v986_v52 = vsub.s32 %v983_v48, %v1659_v49  ;;  %v1124_v45 = vsub.s32 1, %v1659_v49  ;;  %v1152_v50 = vsub.s32 5, %v1659_v49 }
 0x145   :  { %782 = vmatpush1.msra.mxu0 %v557_v57  ;;  %853 = vmatpush1.msra.mxu1 %v559_v58  ;;  %v1047_v57 = vunpack.c.0.s8 %v1046_v51  ;;  %v1145_v51 = vsub.s32 4, %v1659_v49 }
 0x146   :  { %783 = vmatprep.subr.mxu0 %v549_v59  ;;  %854 = vmatprep.subr.mxu1 %v551_v60 }
 0x147   :  { %784 = vmatpush1.msra.mxu0 %v548_v61  ;;  %855 = vmatpush1.msra.mxu1 %v550_v62 }
 0x148   :  { %785 = vmatprep.subr.mxu0 %v540_v63  ;;  %856 = vmatprep.subr.mxu1 %v542_v0  ;;  %v1050_v0 = vsub.s32 %v1047_v57, %v1659_v49 }
 0x149   :  { %786 = vmatpush1.msra.mxu0 %v539_v1  ;;  %857 = vmatpush1.msra.mxu1 %v541_v2 }
 0x14a   :  { %787 = vmatprep.subr.mxu0 %v531_v3  ;;  %858 = vmatprep.subr.mxu1 %v533_v4 }
 0x14b   :  { %788 = vmatpush1.msra.mxu0 %v530_v5  ;;  %859 = vmatpush1.msra.mxu1 %v532_v6 }
 0x14c   :  { %789 = vmatprep.subr.mxu0 %v522_v7  ;;  %860 = vmatprep.subr.mxu1 %v524_v8 }
 0x14d   :  { %790 = vmatpush1.msra.mxu0 %v521_v9  ;;  %861 = vmatpush1.msra.mxu1 %v523_v11 }
 0x14e   :  { %791 = vmatprep.subr.mxu0 %v513_v12  ;;  %862 = vmatprep.subr.mxu1 %v515_v13 }
 0x14f   :  { %792 = vmatpush1.msra.mxu0 %v512_v14  ;;  %863 = vmatpush1.msra.mxu1 %v514_v15 }
 0x150   :  { %793 = vmatprep.subr.mxu0 %v504_v16  ;;  %864 = vmatprep.subr.mxu1 %v506_v17 }
 0x151   :  { %794 = vmatpush1.msra.mxu0 %v503_v18  ;;  %865 = vmatpush1.msra.mxu1 %v505_v19 }
 0x152   :  { %795 = vmatprep.subr.mxu0 %v495_v20  ;;  %866 = vmatprep.subr.mxu1 %v497_v21 }
 0x153   :  { %796 = vmatpush1.msra.mxu0 %v494_v22  ;;  %867 = vmatpush1.msra.mxu1 %v496_v23 }
 0x154   :  { %797 = vmatprep.subr.mxu0 %v486_v24  ;;  %868 = vmatprep.subr.mxu1 %v488_v25 }
 0x155   :  { %798 = vmatpush1.msra.mxu0 %v485_v26  ;;  %831 = vmatprep.mubr.f32.mxu0 %v1589_v10 }
 0x156   :  { %869 = vmatpush1.msra.mxu1 %v487_v27  ;;  %902 = vmatprep.mubr.f32.mxu1 %v1589_v10 }
 0x157   :  { %832 = vmatmul.mubr.f32.vlgmr.msra.gmra.mxu0 %v1633_v28  ;;  %903 = vmatmul.mubr.f32.vlgmr.msra.gmra.mxu1 %v1633_v28 }
 0x158   :  { %1449 = vmatprep.subr.mxu0 %v1589_v10  ;;  %1481 = vmatprep.mubr.msk.f32.mxu0 %vm1590_vm0, %v1589_v10 }
 0x159   :  { %1450 = vmatpush3.msra.mxu0 %v624_v29 }
 0x15a   :  { %1451 = vmatprep.subr.mxu0 %v1589_v10 }
 0x15b   :  { %1452 = vmatpush3.msra.mxu0 %v615_v30 }
 0x15c   :  { %1453 = vmatprep.subr.mxu0 %v1589_v10 }
 0x15d   :  { %1454 = vmatpush3.msra.mxu0 %v606_v31 }
 0x15e   :  { %1455 = vmatprep.subr.mxu0 %v1589_v10 }
 0x15f   :  { %1456 = vmatpush3.msra.mxu0 %v597_v32 }
 0x160   :  { %1457 = vmatprep.subr.mxu0 %v1589_v10 }
 0x161   :  { %1458 = vmatpush3.msra.mxu0 %v588_v33 }
 0x162   :  { %1459 = vmatprep.subr.mxu0 %v1589_v10 }
 0x163   :  { %1460 = vmatpush3.msra.mxu0 %v579_v34 }
 0x164   :  { %1461 = vmatprep.subr.mxu0 %v1589_v10 }
 0x165   :  { %1462 = vmatpush3.msra.mxu0 %v570_v35 }
 0x166   :  { %1463 = vmatprep.subr.mxu0 %v1589_v10 }
 0x167   :  { %1464 = vmatpush3.msra.mxu0 %v561_v36 }
 0x168   :  { %1465 = vmatprep.subr.mxu0 %v1589_v10 }
 0x169   :  { %1466 = vmatpush3.msra.mxu0 %v552_v37 }
 0x16a   :  { %1467 = vmatprep.subr.mxu0 %v1589_v10 }
 0x16b   :  { %1468 = vmatpush3.msra.mxu0 %v543_v38 }
 0x16c   :  { %1469 = vmatprep.subr.mxu0 %v1589_v10 }
 0x16d   :  { %1470 = vmatpush3.msra.mxu0 %v534_v39  ;;  %v1131_v39 = vsub.s32 2, %v1659_v49 }
 0x16e   :  { %1471 = vmatprep.subr.mxu0 %v1589_v10 }
 0x16f   :  { %1472 = vmatpush3.msra.mxu0 %v525_v40  ;;  %v1117_v40 = vsub.s32 0, %v1659_v49 }
 0x170   :  { %1473 = vmatprep.subr.mxu0 %v1589_v10 }
 0x171   :  { %1474 = vmatpush3.msra.mxu0 %v516_v41 }
 0x172   :  { %1475 = vmatprep.subr.mxu0 %v1589_v10 }
 0x173   :  { %1476 = vmatpush3.msra.mxu0 %v507_v42 }
 0x174   :  { %1477 = vmatprep.subr.mxu0 %v1589_v10 }
 0x175   :  { %1478 = vmatpush3.msra.mxu0 %v498_v43 }
 0x176   :  { %1479 = vmatprep.subr.mxu0 %v1589_v10 }
 0x177   :  { %1480 = vmatpush3.msra.mxu0 %v489_v44  ;;  %v1138_v44 = vsub.s32 3, %v1659_v49 }
 0x178   :  { %1482 = vmatmul.mubr.f32.vlgmr.msra.gmra.mxu0 %v1633_v28 }
 0x1f6   :  { %v691_v53 = vpop.f32.mrf.mxu0  ;;  %v762_v54 = vpop.f32.mrf.mxu1 }
 0x1f7   :  { %v979_v55 = vcombine.low %v691_v53, %v762_v54  ;;  %v980_v56 = vcombine.high %v691_v53, %v762_v54  ;;  %v1166_v54 = vsub.s32 7, %v1659_v49 }
 0x1f8   :  { %v693_v58 = vpop.f32.mrf.mxu0  ;;  %v764_v10 = vpop.f32.mrf.mxu1 }
 0x1f9   :  { %v987_v59 = vrot.slane %v979_v55, %v986_v52  ;;  %v994_v60 = vrot.slane %v980_v56, %v986_v52  ;;  %v995_v28 = vcombine.low %v693_v58, %v764_v10  ;;  %v996_v61 = vcombine.high %v693_v58, %v764_v10 }
 0x1fa   :  { %v1159_v55 = vsub.s32 6, %v1659_v49 }
 0x1fb   :  { %v1003_v62 = vrot.slane %v995_v28, %v986_v52  ;;  %v1010_v63 = vrot.slane %v996_v61, %v986_v52 }
 0x1fd   :  { %v1043_v1 = vcombine.low %v987_v59, %v1003_v62  ;;  %v1044_v2 = vcombine.high %v987_v59, %v1003_v62  ;;  %v1059_v3 = vcombine.low %v994_v60, %v1010_v63  ;;  %v1060_v4 = vcombine.high %v994_v60, %v1010_v63 }
 0x1ff   :  { %v1663_v5 = vrot.slane %v1044_v2, %v1050_v0  ;;  %v1665_v6 = vrot.slane %v1043_v1, %v1050_v0  ;;  %v1667_v7 = vrot.slane %v1059_v3, %v1050_v0  ;;  %v1669_v8 = vrot.slane %v1060_v4, %v1050_v0 }
 0x217   :  { %v833_v9 = vpop.f32.mrf.mxu0  ;;  %v904_v11 = vpop.f32.mrf.mxu1 }
 0x218   :  { %v1011_v12 = vcombine.low %v833_v9, %v904_v11  ;;  %v1012_v13 = vcombine.high %v833_v9, %v904_v11 }
 0x219   :  { %v835_v14 = vpop.f32.mrf.mxu0  ;;  %v906_v15 = vpop.f32.mrf.mxu1 }
 0x21a   :  { %v1019_v16 = vrot.slane %v1011_v12, %v986_v52  ;;  %v1026_v17 = vrot.slane %v1012_v13, %v986_v52  ;;  %v1027_v18 = vcombine.low %v835_v14, %v906_v15  ;;  %v1028_v19 = vcombine.high %v835_v14, %v906_v15 }
 0x21c   :  { %v1035_v20 = vrot.slane %v1027_v18, %v986_v52  ;;  %v1042_v21 = vrot.slane %v1028_v19, %v986_v52 }
 0x21e   :  { %v1075_v22 = vcombine.low %v1019_v16, %v1035_v20  ;;  %v1076_v23 = vcombine.high %v1019_v16, %v1035_v20  ;;  %v1091_v24 = vcombine.low %v1026_v17, %v1042_v21  ;;  %v1092_v25 = vcombine.high %v1026_v17, %v1042_v21 }
 0x220   :  { %v1090_v26 = vrot.slane %v1076_v23, %v1050_v0  ;;  %v1083_v27 = vrot.slane %v1075_v22, %v1050_v0  ;;  %v1671_v29 = vrot.slane %v1091_v24, %v1050_v0  ;;  %v1673_v30 = vrot.slane %v1092_v25, %v1050_v0 }
 0x222   :  { %v1109_v31 = vcombine.low %v1663_v5, %v1090_v26  ;;  %v1107_v32 = vcombine.low %v1665_v6, %v1083_v27  ;;  %v1110_v33 = vcombine.high %v1663_v5, %v1090_v26  ;;  %v1108_v34 = vcombine.high %v1665_v6, %v1083_v27 }
 0x223   :  { %v1112_v35 = vcombine.high %v1667_v7, %v1671_v29  ;;  %v1111_v36 = vcombine.low %v1667_v7, %v1671_v29  ;;  %v1114_v37 = vcombine.high %v1669_v8, %v1673_v30  ;;  %v1113_v38 = vcombine.low %v1669_v8, %v1673_v30 }
 0x238   :  { %v975_v41 = vpop.f32.mrf.mxu0 }
 0x239   :  { %v1132_v42 = vrot.slane %v975_v41, %v1131_v39  ;;  %v1118_v43 = vrot.slane %v975_v41, %v1117_v40  ;;  %v1139_v47 = vrot.slane %v975_v41, %v1138_v44  ;;  %v1125_v48 = vrot.slane %v975_v41, %v1124_v45 }
 0x23a   :  { %v1483_v46 = vpop.f32.mrf.mxu0  ;;  %v1153_v52 = vrot.slane %v975_v41, %v1152_v50  ;;  %v1146_v53 = vrot.slane %v975_v41, %v1145_v51  ;;  %v1167_v56 = vrot.slane %v975_v41, %v1166_v54  ;;  %v1160_v57 = vrot.slane %v975_v41, %v1159_v55 }
 0x23b   :  { %1134 = vbcast.lane.b32.xlu1 %v1132_v42, 256  ;;  %1120 = vbcast.lane.b32.xlu0 %v1118_v43, 256 }
 0x23f   :  { %1141 = vbcast.lane.b32.xlu1 %v1139_v47, 256  ;;  %1127 = vbcast.lane.b32.xlu0 %v1125_v48, 256 }
 0x243   :  { %1155 = vbcast.lane.b32.xlu1 %v1153_v52, 256  ;;  %1148 = vbcast.lane.b32.xlu0 %v1146_v53, 256 }
 0x247   :  { %1169 = vbcast.lane.b32.xlu1 %v1167_v56, 256  ;;  %1162 = vbcast.lane.b32.xlu0 %v1160_v57, 256 }
 0x2ad   :  { %v1135_v58 = vpop.permute.xlu1 %1134  ;;  %v1121_v10 = vpop.permute.xlu0 %1120 }
 0x2ae   :  { %vm1173_vm1 = vcmp.ge.f32.partialorder %v1135_v58, 0.0  ;;  %vm1171_vm2 = vcmp.ge.f32.partialorder %v1121_v10, 0.0 }
 0x2af   :  { %v1197_v59 = vsel %vm1173_vm1, %v1109_v31, 0.0  ;;  %v1195_v60 = vsel %vm1171_vm2, %v1107_v32, 0.0 }
 0x2b0   :  { %v1215_v28 = vrot.slane %v1197_v59, 4  ;;  %v1203_v61 = vrot.slane %v1195_v60, 4 }
 0x2b1   :  { %v1142_v62 = vpop.permute.xlu1 %1141  ;;  %v1128_v63 = vpop.permute.xlu0 %1127 }
 0x2b2   :  { %v1216_v0 = vadd.f32 %v1215_v28, %v1197_v59  ;;  %v1204_v1 = vadd.f32 %v1203_v61, %v1195_v60  ;;  %vm1174_vm3 = vcmp.ge.f32.partialorder %v1142_v62, 0.0  ;;  %vm1172_vm4 = vcmp.ge.f32.partialorder %v1128_v63, 0.0 }
 0x2b3   :  { %v1198_v49 = vsel %vm1174_vm3, %v1110_v33, 0.0  ;;  %v1196_v2 = vsel %vm1172_vm4, %v1108_v34, 0.0 }
 0x2b4   :  { %v1217_v3 = vrot.slane %v1216_v0, 2  ;;  %v1205_v4 = vrot.slane %v1204_v1, 2  ;;  %v1221_v5 = vrot.slane %v1198_v49, 4  ;;  %v1209_v6 = vrot.slane %v1196_v2, 4 }
 0x2b5   :  { %v1156_v7 = vpop.permute.xlu1 %1155  ;;  %v1149_v9 = vpop.permute.xlu0 %1148 }
 0x2b6   :  { %v1218_v11 = vadd.f32 %v1217_v3, %v1216_v0  ;;  %v1206_v12 = vadd.f32 %v1205_v4, %v1204_v1  ;;  %v1222_v13 = vadd.f32 %v1221_v5, %v1198_v49  ;;  %v1210_v14 = vadd.f32 %v1209_v6, %v1196_v2 }
 0x2b7   :  { %vm1176_vm5 = vcmp.ge.f32.partialorder %v1156_v7, 0.0  ;;  %vm1175_vm6 = vcmp.ge.f32.partialorder %v1149_v9, 0.0 }
 0x2b8   :  { %v1223_v15 = vrot.slane %v1222_v13, 2  ;;  %v1211_v16 = vrot.slane %v1210_v14, 2  ;;  %v1200_v17 = vsel %vm1176_vm5, %v1112_v35, 0.0  ;;  %v1199_v18 = vsel %vm1175_vm6, %v1111_v36, 0.0 }
 0x2b9   :  { %v1170_v19 = vpop.permute.xlu1 %1169  ;;  %v1163_v20 = vpop.permute.xlu0 %1162  ;;  %v1219_v21 = vrot.slane %v1218_v11, 1  ;;  %v1207_v22 = vrot.slane %v1206_v12, 1  ;;  %v1233_v25 = vrot.slane %v1200_v17, 4  ;;  %v1227_v26 = vrot.slane %v1199_v18, 4 }
 0x2ba   :  { %v1224_v23 = vadd.f32 %v1223_v15, %v1222_v13  ;;  %v1212_v24 = vadd.f32 %v1211_v16, %v1210_v14  ;;  %vm1178_vm9 = vcmp.ge.f32.partialorder %v1170_v19, 0.0  ;;  %vm1177_vm10 = vcmp.ge.f32.partialorder %v1163_v20, 0.0 }
 0x2bb   :  { %v1202_v31 = vsel %vm1178_vm9, %v1114_v37, 0.0  ;;  %v1201_v32 = vsel %vm1177_vm10, %v1113_v38, 0.0  ;;  %v1234_v33 = vadd.f32 %v1233_v25, %v1200_v17  ;;  %v1228_v34 = vadd.f32 %v1227_v26, %v1199_v18 }
 0x2bc   :  { %v1225_v27 = vrot.slane %v1224_v23, 1  ;;  %v1213_v29 = vrot.slane %v1212_v24, 1  ;;  %v1245_v35 = vrot.slane %v1202_v31, 4  ;;  %v1239_v36 = vrot.slane %v1201_v32, 4 }
 0x2bd   :  { %v1220_v39 = vadd.f32 %v1219_v21, %v1218_v11  ;;  %v1208_v40 = vadd.f32 %v1207_v22, %v1206_v12  ;;  %v1235_v42 = vrot.slane %v1234_v33, 2  ;;  %v1229_v43 = vrot.slane %v1228_v34, 2 }
 0x2be   :  { %v1214_v41 = vadd.f32 %v1213_v29, %v1212_v24  ;;  %v1246_v44 = vadd.f32 %v1245_v35, %v1202_v31  ;;  %v1240_v45 = vadd.f32 %v1239_v36, %v1201_v32  ;;  %v1226_v46 = vadd.f32 %v1225_v27, %v1224_v23 }
 0x2bf   :  { %v1236_v48 = vadd.f32 %v1235_v42, %v1234_v33  ;;  %v1230_v8 = vadd.f32 %v1229_v43, %v1228_v34 }
 0x2c0   :  { %v1260_v47 = vsel %vm1259_vm7, %v1214_v41, %v1208_v40  ;;  %v1247_v30 = vrot.slane %v1246_v44, 2  ;;  %v1241_v38 = vrot.slane %v1240_v45, 2 }
 0x2c1   :  { %v1262_v37 = vsel %vm1261_vm8, %v1220_v39, %v1260_v47  ;;  %v1237_v51 = vrot.slane %v1236_v48, 1  ;;  %v1231_v52 = vrot.slane %v1230_v8, 1 }
 0x2c2   :  { %v1264_v50 = vsel %vm1263_vm11, %v1226_v46, %v1262_v37  ;;  %v1248_v53 = vadd.f32 %v1247_v30, %v1246_v44  ;;  %v1242_v54 = vadd.f32 %v1241_v38, %v1240_v45 }
 0x2c3   :  { %v1238_v55 = vadd.f32 %v1237_v51, %v1236_v48  ;;  %v1232_v56 = vadd.f32 %v1231_v52, %v1230_v8 }
 0x2c4   :  { %v1249_v57 = vrot.slane %v1248_v53, 1  ;;  %v1243_v58 = vrot.slane %v1242_v54, 1 }
 0x2c5   :  { %v1266_v59 = vsel %vm1265_vm12, %v1232_v56, %v1264_v50 }
 0x2c6   :  { %v1250_v10 = vadd.f32 %v1249_v57, %v1248_v53  ;;  %v1244_v60 = vadd.f32 %v1243_v58, %v1242_v54  ;;  %v1268_v28 = vsel %vm1267_vm13, %v1238_v55, %v1266_v59 }
 0x2c8   :  { %v1270_v61 = vsel %vm1269_vm14, %v1244_v60, %v1268_v28 }
 0x2c9   :  { %v1272_v62 = vsel %vm1271_vm15, %v1250_v10, %v1270_v61 }
 0x2ca   :  { %1274 = vst [vmem:[#allocation8] sm:$0xff] %v1272_v62 }
 0x2cb   :  { %1567 = shalt.err (!%p1564_p5)
}
 0x2cc   :  { %1284 = dma.vmem_to_hbm [thread:$0]  %s1282_s7, 128, %s1710_s4, [#allocation4]  }
 0x2cd   :  { %1580 = dma.done.wait [#allocation4], 128  }
 0x2ce   :  { %1581 = vsyncadd [#allocation4], 4294967168 }
 0x2cf   :  { %1288 = vsyncpa [#allocation3], 1 }
 0x2d0   :  { %1289 = vsyncpa [#allocation6], 1 }
 0x2d1   :  { %1290 = vsyncpa [#allocation4], 1 }

</bundles_post_ra>
